<compile_context>
chip_gen: v6e
topology: v6e:2x2x1
jax: 0.10.0
libtpu: 0.0.40
codegen_flags: <defaults>
</compile_context>

<pallas_src>
import jax
import jax.numpy as jnp
from jax.experimental import pallas as pl
from jax.experimental.pallas import tpu as pltpu


def _round_up(x, m):
    return ((x + m - 1) // m) * m


_PER_BRANCH_REFS = 7


def _make_gat_kernel(G, B, N, D, Da):
    """Kernel that processes G attention branches in ONE invocation.

    Input ref layout (in order):
      [0] q_ref     (B, D)       f32   query utterance (shared)
      [1] wr_ref    (2D, Dp)     bf16  [Wr0^T ; Wr1^T], lane-dense padded
      per branch g (7 refs):
        k_ref       (B*N, D)     f32   context rows
        kk_ref      (B*N, Kd)    f32   knowledge rows
        adj_ref     (B, N, 1)    f32   density adjacency (0/1)
        sm_ref      (B, N, 1)    f32   speaker mask (0/1)
        wk_k_ref    (D, Da)      bf16  [WkK | WkK @ wka]  (score column folded)
        wk_kk_ref   (Kd, Da)     bf16  [Wkk | Wkk @ wka]
        small_ref   (2, Da)      f32   row0 = [bk | bk@wka + ba]  (bias row)
                                       row1 = [wq | 0]            (att Q-part)
    Outputs: G refs, each (B, Dp) f32.
    """
    f32, bf16 = jnp.float32, jnp.bfloat16

    def kernel(*refs):
        q_ref, wr_ref = refs[0], refs[1]
        q = q_ref[...]                                    # (B, D)  f32
        wr = wr_ref[...]                                  # (2D, Dp) bf16

        for g in range(G):                                # static unroll, G<=2
            base = 2 + g * _PER_BRANCH_REFS
            (k_ref, kk_ref, adj_ref, sm_ref,
             wk_k_ref, wk_kk_ref, small_ref) = refs[base:base + _PER_BRANCH_REFS]
            out_ref = refs[2 + G * _PER_BRANCH_REFS + g]

            small = small_ref[...]                        # (2, Da) f32

            # One tall MXU pass (bf16 operands, f32 accumulation) emits fK and
            # (k_score + att_bias) together: k_liner bias folded via the bias
            # row; attention K-part and bias folded via the extra weight col.
            fkp = (jnp.dot(k_ref[...].astype(bf16), wk_k_ref[...],
                           preferred_element_type=f32)
                   + jnp.dot(kk_ref[...].astype(bf16), wk_kk_ref[...],
                             preferred_element_type=f32)
                   + small[0:1, :])                       # (B*N, Da)
            fkp = fkp.reshape(B, N, Da)                   # leading-dim split
            fK = fkp[:, :, :D]                            # (B, N, D)  f32
            k_score = fkp[:, :, D:]                       # (B, N, 1) = fK@wka+ba

            # alpha = linear_den([Q, fK]); mask; softmax stats (all f32).
            wq = small[1:2, :D]                           # (1, D)
            q_score = jnp.sum(q * wq, axis=-1, keepdims=True)      # (B, 1)
            alpha = k_score + q_score.reshape(B, 1, 1)              # (B, N, 1)
            adj = adj_ref[...]                                      # (B, N, 1)
            alpha = alpha - (1.0 - adj) * 1e30
            m = jnp.max(alpha, axis=1, keepdims=True)               # (B, 1, 1)
            e = jnp.exp(alpha - m)                                  # (B, N, 1)
            inv = pl.reciprocal(jnp.sum(e, axis=1), approx=True)    # (B, 1)

            # Deferred-normalization value path: reduce over N first, scale by
            # the softmax-denominator reciprocal once, then ONE fused
            # (B, 2D)x(2D, Dp) matmul against the stacked Wr0^T / Wr1^T.
            smask = sm_ref[...]                                     # (B, N, 1)
            es0 = e * smask                                         # e * s_mask
            es1 = e - es0                                           # e * (1-s_mask)
            a0 = jnp.sum(fK * es0, axis=1)                          # (B, D)
            a1 = jnp.sum(fK * es1, axis=1)                          # (B, D)
            acat = jnp.concatenate([a0, a1], axis=-1) * inv         # (B, 2D)
            out_ref[...] = jnp.dot(acat.astype(bf16), wr,
                                   preferred_element_type=f32)       # (B, Dp)

    return kernel


def gat_fused_branches(Q, Ks, kks, adjs, smasks, Wks, bks, wqs, wkas, bas,
                       Wr0T, Wr1T):
    """Runs G attention branches (front and/or back) in ONE pallas_call.

    All list arguments have length G (1 or 2).  Returns a list of G (B, D)
    float32 arrays.
    """
    G = len(Ks)
    B, N, D = Ks[0].shape
    Kd = kks[0].shape[-1]
    Da = D + 1                       # fK columns + folded k_score column
    Dp = _round_up(D, 128)           # lane-dense output width
    f32, bf16 = jnp.float32, jnp.bfloat16

    # Shared output weight, stacked + padded lane-dense (weight-only prep).
    wr = jnp.concatenate([Wr0T, Wr1T], axis=0)                      # (2D, D)
    wr = jnp.pad(wr, ((0, 0), (0, Dp - D))).astype(bf16)            # (2D, Dp)

    args = [Q.astype(f32), wr]
    for g in range(G):
        Wk = Wks[g]
        bk = bks[g].reshape(1, D)
        wq = wqs[g].reshape(1, D)
        wka = wkas[g].reshape(D, 1)
        ba = bas[g].reshape(1, 1)
        WkK, Wkk = Wk[:D, :], Wk[D:, :]
        # Fold the attention K-part into an extra weight column, and the
        # k_liner bias / attention bias into one bias row (tiny weight-only
        # XLA ops; activations are passed through untouched).
        wk_k_aug = jnp.concatenate([WkK, WkK @ wka], axis=1).astype(bf16)   # (D, Da)
        wk_kk_aug = jnp.concatenate([Wkk, Wkk @ wka], axis=1).astype(bf16)  # (Kd, Da)
        small = jnp.concatenate(
            [jnp.concatenate([bk, bk @ wka + ba], axis=1),
             jnp.concatenate([wq, jnp.zeros((1, 1), f32)], axis=1)],
            axis=0).astype(f32)                                             # (2, Da)
        args += [
            Ks[g].reshape(B * N, D).astype(f32),      # free metadata reshape
            kks[g].reshape(B * N, Kd).astype(f32),
            adjs[g].astype(f32)[..., None],           # (B, N, 1)
            smasks[g].astype(f32)[..., None],         # (B, N, 1)
            wk_k_aug, wk_kk_aug, small,
        ]

    kernel = _make_gat_kernel(G, B, N, D, Da)
    out_shapes = tuple(jax.ShapeDtypeStruct((B, Dp), f32) for _ in range(G))

    outs = pl.pallas_call(
        kernel,
        out_shape=out_shapes,
        compiler_params=pltpu.CompilerParams(
            vmem_limit_bytes=32 * 1024 * 1024),
    )(*args)
    if not isinstance(outs, (list, tuple)):
        outs = (outs,)
    return [o[:, :D] for o in outs]                                 # strip pad


def init_params(key, hidden_dim, know_dim):
    ks = jax.random.split(key, 10)
    s = 0.1
    D, Kd = hidden_dim, know_dim
    return {
        # front_k_liner: Linear(D+Kd, D) -> stored as W^T so y = x @ W
        "front_Wk": s * jax.random.normal(ks[0], (D + Kd, D), jnp.float32),
        "front_bk": s * jax.random.normal(ks[1], (1, D), jnp.float32),
        # front_linear_den: Linear(2D, 1) -> split into Q part / K part
        "front_wq": s * jax.random.normal(ks[2], (1, D), jnp.float32),
        "front_wka": s * jax.random.normal(ks[3], (D, 1), jnp.float32),
        "front_ba": s * jax.random.normal(ks[4], (1, 1), jnp.float32),
        # back_k_liner / back_linear_den
        "back_Wk": s * jax.random.normal(ks[5], (D + Kd, D), jnp.float32),
        "back_bk": s * jax.random.normal(ks[6], (1, D), jnp.float32),
        "back_wq": s * jax.random.normal(ks[7], (1, D), jnp.float32),
        "back_wka": s * jax.random.normal(ks[8], (D, 1), jnp.float32),
        "back_ba": s * jax.random.normal(ks[9], (1, 1), jnp.float32),
        # Wr0, Wr1: Linear(D, D, bias=False), shared between branches
        "Wr0T": s * jax.random.normal(jax.random.fold_in(key, 100), (D, D), jnp.float32),
        "Wr1T": s * jax.random.normal(jax.random.fold_in(key, 101), (D, D), jnp.float32),
    }


def gat_dialoggcn_v1_forward(params, i, num_utter, Q, K, V,
                             front_sdj_den, front_s_mask, front_k1,
                             back_K, back_V, back_sdj_den, back_s_mask,
                             back_k2):
    """Matches GAT_dialoggcn_v1.forward (V / back_V are unused, as in torch)."""
    Ks, kks, adjs, sms = [], [], [], []
    Wks, bks, wqs, wkas, bas = [], [], [], [], []
    use_front = (i != 0)
    use_back = (i != num_utter - 1)
    if use_front:
        Ks.append(K); kks.append(front_k1)
        adjs.append(front_sdj_den); sms.append(front_s_mask)
        Wks.append(params["front_Wk"]); bks.append(params["front_bk"])
        wqs.append(params["front_wq"]); wkas.append(params["front_wka"])
        bas.append(params["front_ba"])
    if use_back:
        Ks.append(back_K); kks.append(back_k2)
        adjs.append(back_sdj_den); sms.append(back_s_mask)
        Wks.append(params["back_Wk"]); bks.append(params["back_bk"])
        wqs.append(params["back_wq"]); wkas.append(params["back_wka"])
        bas.append(params["back_ba"])

    front_sum_den = jnp.zeros_like(Q)
    back_sum_den = jnp.zeros_like(Q)
    if Ks:
        outs = gat_fused_branches(Q, Ks, kks, adjs, sms, Wks, bks, wqs, wkas,
                                  bas, params["Wr0T"], params["Wr1T"])
        idx = 0
        if use_front:
            front_sum_den = outs[idx]
            idx += 1
        if use_back:
            back_sum_den = outs[idx]
    return front_sum_den, back_sum_den


# ----------------------------- references ----------------------------------

def _ref_branch_f32(Q, K, kk, adj, sm, Wk, bk, wq, wka, ba, Wr0T, Wr1T):
    """Pure-JAX f32 reference mirroring the torch code exactly."""
    B, N, D = K.shape
    fK = jnp.concatenate([K, kk], axis=-1) @ Wk + bk              # (B,N,D)
    fQ = jnp.broadcast_to(Q[:, None, :], (B, N, D))
    X = jnp.concatenate([fQ, fK], axis=-1)                        # (B,N,2D)
    w_att = jnp.concatenate([wq, wka.T], axis=-1)                 # (1,2D)
    alpha = (X @ w_att.T)[..., 0] + ba[0, 0]                      # (B,N)
    alpha = alpha - (1.0 - adj) * 1e30
    w = jax.nn.softmax(alpha, axis=-1)
    V0 = fK @ Wr0T
    V1 = fK @ Wr1T
    smf = sm[..., None].astype(jnp.float32)
    Vm = V0 * smf + V1 * (1.0 - smf)
    return jnp.einsum("bn,bnd->bd", w, Vm)


def _ref_branch_mimic(Q, K, kk, adj, sm, Wk, bk, wq, wka, ba, Wr0T, Wr1T):
    """Reference replicating the kernel's folded / bf16-operand math."""
    bf16, f32 = jnp.bfloat16, jnp.float32
    B, N, D = K.shape
    WkK, Wkk = Wk[:D, :], Wk[D:, :]
    wk_k_aug = jnp.concatenate([WkK, WkK @ wka], axis=1).astype(bf16)
    wk_kk_aug = jnp.concatenate([Wkk, Wkk @ wka], axis=1).astype(bf16)
    bias_row = jnp.concatenate([bk, bk @ wka + ba], axis=1)       # (1, D+1)
    fkp = (jnp.einsum("bnd,de->bne", K.astype(bf16), wk_k_aug,
                      preferred_element_type=f32)
           + jnp.einsum("bnk,ke->bne", kk.astype(bf16), wk_kk_aug,
                        preferred_element_type=f32)
           + bias_row[None])                                      # (B,N,D+1)
    fK = fkp[..., :D]
    k_score = fkp[..., D]                                         # (B,N)
    q_score = Q @ wq.reshape(D)                                   # (B,)
    alpha = k_score + q_score[:, None]
    alpha = alpha - (1.0 - adj) * 1e30
    m = jnp.max(alpha, axis=1, keepdims=True)
    e = jnp.exp(alpha - m)
    denom = jnp.sum(e, axis=1, keepdims=True)
    es0 = e * sm
    es1 = e - es0
    a0 = jnp.einsum("bn,bnd->bd", es0, fK)
    a1 = jnp.einsum("bn,bnd->bd", es1, fK)
    acat = jnp.concatenate([a0, a1], axis=-1) / denom
    wr = jnp.concatenate([Wr0T, Wr1T], axis=0).astype(bf16)
    return jnp.dot(acat.astype(bf16), wr, preferred_element_type=f32)


if __name__ == "__main__":
    B, N, D, Kd = 2, 8, 32, 16
    i, num_utter = 1, 3  # both front and back branches active

    key = jax.random.PRNGKey(0)
    params = init_params(jax.random.fold_in(key, 1), D, Kd)

    ks = jax.random.split(key, 12)
    Q = jax.random.normal(ks[0], (B, D), jnp.float32)
    K = jax.random.normal(ks[1], (B, N, D), jnp.float32)
    V = jax.random.normal(ks[2], (B, N, D), jnp.float32)       # unused (as in torch)
    back_K = jax.random.normal(ks[3], (B, N, D), jnp.float32)
    back_V = jax.random.normal(ks[4], (B, N, D), jnp.float32)  # unused
    front_k1 = jax.random.normal(ks[5], (B, N, Kd), jnp.float32)
    back_k2 = jax.random.normal(ks[6], (B, N, Kd), jnp.float32)

    front_sdj_den = jax.random.bernoulli(ks[7], 0.6, (B, N)).astype(jnp.float32)
    front_sdj_den = front_sdj_den.at[:, 0].set(1.0)
    back_sdj_den = jax.random.bernoulli(ks[8], 0.6, (B, N)).astype(jnp.float32)
    back_sdj_den = back_sdj_den.at[:, 0].set(1.0)
    front_s_mask = jax.random.bernoulli(ks[9], 0.5, (B, N)).astype(jnp.float32)
    back_s_mask = jax.random.bernoulli(ks[10], 0.5, (B, N)).astype(jnp.float32)

    front_out, back_out = gat_dialoggcn_v1_forward(
        params, i, num_utter, Q, K, V,
        front_sdj_den, front_s_mask, front_k1,
        back_K, back_V, back_sdj_den, back_s_mask, back_k2)
    jax.block_until_ready((front_out, back_out))

    # tight check against a reference with matching folded / bf16 math
    front_ref_b = _ref_branch_mimic(Q, K, front_k1, front_sdj_den, front_s_mask,
                                    params["front_Wk"], params["front_bk"],
                                    params["front_wq"], params["front_wka"],
                                    params["front_ba"], params["Wr0T"], params["Wr1T"])
    back_ref_b = _ref_branch_mimic(Q, back_K, back_k2, back_sdj_den, back_s_mask,
                                   params["back_Wk"], params["back_bk"],
                                   params["back_wq"], params["back_wka"],
                                   params["back_ba"], params["Wr0T"], params["Wr1T"])
    assert jnp.allclose(front_out, front_ref_b, rtol=1e-2, atol=1e-2)
    assert jnp.allclose(back_out, back_ref_b, rtol=1e-2, atol=1e-2)

    # loose check against the torch-faithful full-f32 reference
    front_ref = _ref_branch_f32(Q, K, front_k1, front_sdj_den, front_s_mask,
                                params["front_Wk"], params["front_bk"],
                                params["front_wq"], params["front_wka"],
                                params["front_ba"], params["Wr0T"], params["Wr1T"])
    back_ref = _ref_branch_f32(Q, back_K, back_k2, back_sdj_den, back_s_mask,
                               params["back_Wk"], params["back_bk"],
                               params["back_wq"], params["back_wka"],
                               params["back_ba"], params["Wr0T"], params["Wr1T"])
    assert jnp.allclose(front_out, front_ref, rtol=5e-2, atol=5e-2)
    assert jnp.allclose(back_out, back_ref, rtol=5e-2, atol=5e-2)
    assert front_out.shape == (B, D) and back_out.shape == (B, D)

    print("KERNEL_OK")
</pallas_src>

<mosaic_0001>
module attributes {stable_mosaic.version = 11 : i64} {
  func.func @kernel(%arg0: memref<2x32xf32, #tpu.memory_space<vmem>>, %arg1: memref<64x128xbf16, #tpu.memory_space<vmem>>, %arg2: memref<16x32xf32, #tpu.memory_space<vmem>>, %arg3: memref<16x16xf32, #tpu.memory_space<vmem>>, %arg4: memref<2x8x1xf32, #tpu.memory_space<vmem>>, %arg5: memref<2x8x1xf32, #tpu.memory_space<vmem>>, %arg6: memref<32x33xbf16, #tpu.memory_space<vmem>>, %arg7: memref<16x33xbf16, #tpu.memory_space<vmem>>, %arg8: memref<2x33xf32, #tpu.memory_space<vmem>>, %arg9: memref<16x32xf32, #tpu.memory_space<vmem>>, %arg10: memref<16x16xf32, #tpu.memory_space<vmem>>, %arg11: memref<2x8x1xf32, #tpu.memory_space<vmem>>, %arg12: memref<2x8x1xf32, #tpu.memory_space<vmem>>, %arg13: memref<32x33xbf16, #tpu.memory_space<vmem>>, %arg14: memref<16x33xbf16, #tpu.memory_space<vmem>>, %arg15: memref<2x33xf32, #tpu.memory_space<vmem>>, %arg16: memref<2x128xf32, #tpu.memory_space<vmem>>, %arg17: memref<2x128xf32, #tpu.memory_space<vmem>>) attributes {dimension_semantics = [], scalar_prefetch = 0 : i64, scratch_operands = 0 : i64, tpu.core_type = #tpu.core_type<tc>} {
    %c0 = arith.constant 0 : index
    %c0_0 = arith.constant 0 : index
    %0 = vector.load %arg0[%c0, %c0_0] : memref<2x32xf32, #tpu.memory_space<vmem>>, vector<2x32xf32>
    %c0_1 = arith.constant 0 : index
    %c0_2 = arith.constant 0 : index
    %1 = vector.load %arg1[%c0_1, %c0_2] : memref<64x128xbf16, #tpu.memory_space<vmem>>, vector<64x128xbf16>
    %c0_3 = arith.constant 0 : index
    %c0_4 = arith.constant 0 : index
    %2 = vector.load %arg8[%c0_3, %c0_4] : memref<2x33xf32, #tpu.memory_space<vmem>>, vector<2x33xf32>
    %c0_5 = arith.constant 0 : index
    %c0_6 = arith.constant 0 : index
    %3 = vector.load %arg2[%c0_5, %c0_6] : memref<16x32xf32, #tpu.memory_space<vmem>>, vector<16x32xf32>
    %4 = arith.truncf %3 : vector<16x32xf32> to vector<16x32xbf16>
    %c0_7 = arith.constant 0 : index
    %c0_8 = arith.constant 0 : index
    %5 = vector.load %arg6[%c0_7, %c0_8] : memref<32x33xbf16, #tpu.memory_space<vmem>>, vector<32x33xbf16>
    %cst = arith.constant dense<0.000000e+00> : vector<16x33xf32>
    %6 = tpu.matmul %4, %5, %cst {dimension_numbers = #tpu.dot_dimension_numbers<[1], [0], [0], [1], [0, 0, 1, 1], [], []>} : vector<16x32xbf16>, vector<32x33xbf16>, vector<16x33xf32> -> vector<16x33xf32>
    %c0_9 = arith.constant 0 : index
    %c0_10 = arith.constant 0 : index
    %7 = vector.load %arg3[%c0_9, %c0_10] : memref<16x16xf32, #tpu.memory_space<vmem>>, vector<16x16xf32>
    %8 = arith.truncf %7 : vector<16x16xf32> to vector<16x16xbf16>
    %c0_11 = arith.constant 0 : index
    %c0_12 = arith.constant 0 : index
    %9 = vector.load %arg7[%c0_11, %c0_12] : memref<16x33xbf16, #tpu.memory_space<vmem>>, vector<16x33xbf16>
    %cst_13 = arith.constant dense<0.000000e+00> : vector<16x33xf32>
    %10 = tpu.matmul %8, %9, %cst_13 {dimension_numbers = #tpu.dot_dimension_numbers<[1], [0], [0], [1], [0, 0, 1, 1], [], []>} : vector<16x16xbf16>, vector<16x33xbf16>, vector<16x33xf32> -> vector<16x33xf32>
    %11 = arith.addf %6, %10 : vector<16x33xf32>
    %12 = vector.extract_strided_slice %2 {offsets = [0, 0], sizes = [1, 33], strides = [1, 1]} : vector<2x33xf32> to vector<1x33xf32>
    %13 = vector.broadcast %12 : vector<1x33xf32> to vector<16x33xf32>
    %14 = arith.addf %11, %13 : vector<16x33xf32>
    %15 = vector.shape_cast %14 : vector<16x33xf32> to vector<2x8x33xf32>
    %16 = vector.extract_strided_slice %15 {offsets = [0, 0, 0], sizes = [2, 8, 32], strides = [1, 1, 1]} : vector<2x8x33xf32> to vector<2x8x32xf32>
    %17 = vector.extract_strided_slice %15 {offsets = [0, 0, 32], sizes = [2, 8, 1], strides = [1, 1, 1]} : vector<2x8x33xf32> to vector<2x8x1xf32>
    %18 = vector.extract_strided_slice %2 {offsets = [1, 0], sizes = [1, 32], strides = [1, 1]} : vector<2x33xf32> to vector<1x32xf32>
    %19 = vector.broadcast %18 : vector<1x32xf32> to vector<2x32xf32>
    %20 = arith.mulf %0, %19 : vector<2x32xf32>
    %cst_14 = arith.constant dense<0.000000e+00> : vector<2xf32>
    %21 = vector.multi_reduction <add>, %20, %cst_14 [1] : vector<2x32xf32> to vector<2xf32>
    %22 = vector.shape_cast %21 : vector<2xf32> to vector<2x1xf32>
    %23 = vector.shape_cast %22 : vector<2x1xf32> to vector<2x1x1xf32>
    %24 = vector.broadcast %23 : vector<2x1x1xf32> to vector<2x8x1xf32>
    %25 = arith.addf %17, %24 : vector<2x8x1xf32>
    %c0_15 = arith.constant 0 : index
    %c0_16 = arith.constant 0 : index
    %c0_17 = arith.constant 0 : index
    %26 = vector.load %arg4[%c0_15, %c0_16, %c0_17] : memref<2x8x1xf32, #tpu.memory_space<vmem>>, vector<2x8x1xf32>
    %cst_18 = arith.constant 1.000000e+00 : f32
    %27 = vector.broadcast %cst_18 : f32 to vector<2x8x1xf32>
    %28 = arith.subf %27, %26 : vector<2x8x1xf32>
    %cst_19 = arith.constant 1.000000e+30 : f32
    %29 = vector.broadcast %cst_19 : f32 to vector<2x8x1xf32>
    %30 = arith.mulf %28, %29 : vector<2x8x1xf32>
    %31 = arith.subf %25, %30 : vector<2x8x1xf32>
    %cst_20 = arith.constant dense<0xFF800000> : vector<2x1xf32>
    %32 = vector.multi_reduction <maximumf>, %31, %cst_20 [1] : vector<2x8x1xf32> to vector<2x1xf32>
    %33 = vector.shape_cast %32 : vector<2x1xf32> to vector<2x1x1xf32>
    %34 = vector.broadcast %33 : vector<2x1x1xf32> to vector<2x8x1xf32>
    %35 = arith.subf %31, %34 : vector<2x8x1xf32>
    %36 = math.exp %35 : vector<2x8x1xf32>
    %cst_21 = arith.constant dense<0.000000e+00> : vector<2x1xf32>
    %37 = vector.multi_reduction <add>, %36, %cst_21 [1] : vector<2x8x1xf32> to vector<2x1xf32>
    %38 = tpu.reciprocal %37 {approx = true} : vector<2x1xf32> -> vector<2x1xf32>
    %c0_22 = arith.constant 0 : index
    %c0_23 = arith.constant 0 : index
    %c0_24 = arith.constant 0 : index
    %39 = vector.load %arg5[%c0_22, %c0_23, %c0_24] : memref<2x8x1xf32, #tpu.memory_space<vmem>>, vector<2x8x1xf32>
    %40 = arith.mulf %36, %39 : vector<2x8x1xf32>
    %41 = arith.subf %36, %40 : vector<2x8x1xf32>
    %42 = vector.broadcast %40 : vector<2x8x1xf32> to vector<2x8x32xf32>
    %43 = arith.mulf %16, %42 : vector<2x8x32xf32>
    %cst_25 = arith.constant dense<0.000000e+00> : vector<2x32xf32>
    %44 = vector.multi_reduction <add>, %43, %cst_25 [1] : vector<2x8x32xf32> to vector<2x32xf32>
    %45 = vector.broadcast %41 : vector<2x8x1xf32> to vector<2x8x32xf32>
    %46 = arith.mulf %16, %45 : vector<2x8x32xf32>
    %cst_26 = arith.constant dense<0.000000e+00> : vector<2x32xf32>
    %47 = vector.multi_reduction <add>, %46, %cst_26 [1] : vector<2x8x32xf32> to vector<2x32xf32>
    %48 = tpu.concatenate %44, %47 in 1 : vector<2x32xf32>, vector<2x32xf32> -> vector<2x64xf32>
    %49 = vector.broadcast %38 : vector<2x1xf32> to vector<2x64xf32>
    %50 = arith.mulf %48, %49 : vector<2x64xf32>
    %51 = arith.truncf %50 : vector<2x64xf32> to vector<2x64xbf16>
    %cst_27 = arith.constant dense<0.000000e+00> : vector<2x128xf32>
    %52 = tpu.matmul %51, %1, %cst_27 {dimension_numbers = #tpu.dot_dimension_numbers<[1], [0], [0], [1], [0, 0, 1, 1], [], []>} : vector<2x64xbf16>, vector<64x128xbf16>, vector<2x128xf32> -> vector<2x128xf32>
    %c0_28 = arith.constant 0 : index
    %c0_29 = arith.constant 0 : index
    %53 = vector.load %arg16[%c0_28, %c0_29] : memref<2x128xf32, #tpu.memory_space<vmem>>, vector<2x128xf32>
    tpu.vector_store %arg16[%c0_28, %c0_29], %52 {strides = array<i32>} : memref<2x128xf32, #tpu.memory_space<vmem>>, vector<2x128xf32>,
    %c0_30 = arith.constant 0 : index
    %c0_31 = arith.constant 0 : index
    %54 = vector.load %arg15[%c0_30, %c0_31] : memref<2x33xf32, #tpu.memory_space<vmem>>, vector<2x33xf32>
    %c0_32 = arith.constant 0 : index
    %c0_33 = arith.constant 0 : index
    %55 = vector.load %arg9[%c0_32, %c0_33] : memref<16x32xf32, #tpu.memory_space<vmem>>, vector<16x32xf32>
    %56 = arith.truncf %55 : vector<16x32xf32> to vector<16x32xbf16>
    %c0_34 = arith.constant 0 : index
    %c0_35 = arith.constant 0 : index
    %57 = vector.load %arg13[%c0_34, %c0_35] : memref<32x33xbf16, #tpu.memory_space<vmem>>, vector<32x33xbf16>
    %cst_36 = arith.constant dense<0.000000e+00> : vector<16x33xf32>
    %58 = tpu.matmul %56, %57, %cst_36 {dimension_numbers = #tpu.dot_dimension_numbers<[1], [0], [0], [1], [0, 0, 1, 1], [], []>} : vector<16x32xbf16>, vector<32x33xbf16>, vector<16x33xf32> -> vector<16x33xf32>
    %c0_37 = arith.constant 0 : index
    %c0_38 = arith.constant 0 : index
    %59 = vector.load %arg10[%c0_37, %c0_38] : memref<16x16xf32, #tpu.memory_space<vmem>>, vector<16x16xf32>
    %60 = arith.truncf %59 : vector<16x16xf32> to vector<16x16xbf16>
    %c0_39 = arith.constant 0 : index
    %c0_40 = arith.constant 0 : index
    %61 = vector.load %arg14[%c0_39, %c0_40] : memref<16x33xbf16, #tpu.memory_space<vmem>>, vector<16x33xbf16>
    %cst_41 = arith.constant dense<0.000000e+00> : vector<16x33xf32>
    %62 = tpu.matmul %60, %61, %cst_41 {dimension_numbers = #tpu.dot_dimension_numbers<[1], [0], [0], [1], [0, 0, 1, 1], [], []>} : vector<16x16xbf16>, vector<16x33xbf16>, vector<16x33xf32> -> vector<16x33xf32>
    %63 = arith.addf %58, %62 : vector<16x33xf32>
    %64 = vector.extract_strided_slice %54 {offsets = [0, 0], sizes = [1, 33], strides = [1, 1]} : vector<2x33xf32> to vector<1x33xf32>
    %65 = vector.broadcast %64 : vector<1x33xf32> to vector<16x33xf32>
    %66 = arith.addf %63, %65 : vector<16x33xf32>
    %67 = vector.shape_cast %66 : vector<16x33xf32> to vector<2x8x33xf32>
    %68 = vector.extract_strided_slice %67 {offsets = [0, 0, 0], sizes = [2, 8, 32], strides = [1, 1, 1]} : vector<2x8x33xf32> to vector<2x8x32xf32>
    %69 = vector.extract_strided_slice %67 {offsets = [0, 0, 32], sizes = [2, 8, 1], strides = [1, 1, 1]} : vector<2x8x33xf32> to vector<2x8x1xf32>
    %70 = vector.extract_strided_slice %54 {offsets = [1, 0], sizes = [1, 32], strides = [1, 1]} : vector<2x33xf32> to vector<1x32xf32>
    %71 = vector.broadcast %70 : vector<1x32xf32> to vector<2x32xf32>
    %72 = arith.mulf %0, %71 : vector<2x32xf32>
    %cst_42 = arith.constant dense<0.000000e+00> : vector<2xf32>
    %73 = vector.multi_reduction <add>, %72, %cst_42 [1] : vector<2x32xf32> to vector<2xf32>
    %74 = vector.shape_cast %73 : vector<2xf32> to vector<2x1xf32>
    %75 = vector.shape_cast %74 : vector<2x1xf32> to vector<2x1x1xf32>
    %76 = vector.broadcast %75 : vector<2x1x1xf32> to vector<2x8x1xf32>
    %77 = arith.addf %69, %76 : vector<2x8x1xf32>
    %c0_43 = arith.constant 0 : index
    %c0_44 = arith.constant 0 : index
    %c0_45 = arith.constant 0 : index
    %78 = vector.load %arg11[%c0_43, %c0_44, %c0_45] : memref<2x8x1xf32, #tpu.memory_space<vmem>>, vector<2x8x1xf32>
    %cst_46 = arith.constant 1.000000e+00 : f32
    %79 = vector.broadcast %cst_46 : f32 to vector<2x8x1xf32>
    %80 = arith.subf %79, %78 : vector<2x8x1xf32>
    %cst_47 = arith.constant 1.000000e+30 : f32
    %81 = vector.broadcast %cst_47 : f32 to vector<2x8x1xf32>
    %82 = arith.mulf %80, %81 : vector<2x8x1xf32>
    %83 = arith.subf %77, %82 : vector<2x8x1xf32>
    %cst_48 = arith.constant dense<0xFF800000> : vector<2x1xf32>
    %84 = vector.multi_reduction <maximumf>, %83, %cst_48 [1] : vector<2x8x1xf32> to vector<2x1xf32>
    %85 = vector.shape_cast %84 : vector<2x1xf32> to vector<2x1x1xf32>
    %86 = vector.broadcast %85 : vector<2x1x1xf32> to vector<2x8x1xf32>
    %87 = arith.subf %83, %86 : vector<2x8x1xf32>
    %88 = math.exp %87 : vector<2x8x1xf32>
    %cst_49 = arith.constant dense<0.000000e+00> : vector<2x1xf32>
    %89 = vector.multi_reduction <add>, %88, %cst_49 [1] : vector<2x8x1xf32> to vector<2x1xf32>
    %90 = tpu.reciprocal %89 {approx = true} : vector<2x1xf32> -> vector<2x1xf32>
    %c0_50 = arith.constant 0 : index
    %c0_51 = arith.constant 0 : index
    %c0_52 = arith.constant 0 : index
    %91 = vector.load %arg12[%c0_50, %c0_51, %c0_52] : memref<2x8x1xf32, #tpu.memory_space<vmem>>, vector<2x8x1xf32>
    %92 = arith.mulf %88, %91 : vector<2x8x1xf32>
    %93 = arith.subf %88, %92 : vector<2x8x1xf32>
    %94 = vector.broadcast %92 : vector<2x8x1xf32> to vector<2x8x32xf32>
    %95 = arith.mulf %68, %94 : vector<2x8x32xf32>
    %cst_53 = arith.constant dense<0.000000e+00> : vector<2x32xf32>
    %96 = vector.multi_reduction <add>, %95, %cst_53 [1] : vector<2x8x32xf32> to vector<2x32xf32>
    %97 = vector.broadcast %93 : vector<2x8x1xf32> to vector<2x8x32xf32>
    %98 = arith.mulf %68, %97 : vector<2x8x32xf32>
    %cst_54 = arith.constant dense<0.000000e+00> : vector<2x32xf32>
    %99 = vector.multi_reduction <add>, %98, %cst_54 [1] : vector<2x8x32xf32> to vector<2x32xf32>
    %100 = tpu.concatenate %96, %99 in 1 : vector<2x32xf32>, vector<2x32xf32> -> vector<2x64xf32>
    %101 = vector.broadcast %90 : vector<2x1xf32> to vector<2x64xf32>
    %102 = arith.mulf %100, %101 : vector<2x64xf32>
    %103 = arith.truncf %102 : vector<2x64xf32> to vector<2x64xbf16>
    %cst_55 = arith.constant dense<0.000000e+00> : vector<2x128xf32>
    %104 = tpu.matmul %103, %1, %cst_55 {dimension_numbers = #tpu.dot_dimension_numbers<[1], [0], [0], [1], [0, 0, 1, 1], [], []>} : vector<2x64xbf16>, vector<64x128xbf16>, vector<2x128xf32> -> vector<2x128xf32>
    %c0_56 = arith.constant 0 : index
    %c0_57 = arith.constant 0 : index
    %105 = vector.load %arg17[%c0_56, %c0_57] : memref<2x128xf32, #tpu.memory_space<vmem>>, vector<2x128xf32>
    tpu.vector_store %arg17[%c0_56, %c0_57], %104 {strides = array<i32>} : memref<2x128xf32, #tpu.memory_space<vmem>>, vector<2x128xf32>,
    return
  }
}

</mosaic_0001>

<bundles_post_ra>
// kernel: tpu_custom_call.1
= control target key start
LH: loop header
LB: loop body
LE: loop exit
PB: predicated region body
PF: predicated region fallthrough
CT: control target
= control target key end

     0   :  { %s1495_s0 = inlined_call_operand.hbm [shape: f32[2,32], index: 0, kind: input, shape index: {}]   ;;  %s1496_s1 = inlined_call_operand.vmem [shape: bf16[64,128], index: 1, kind: input, shape index: {}]   ;;  %s1497_s2 = inlined_call_operand.vmem [shape: f32[16,32], index: 2, kind: input, shape index: {}]   ;;  %s1498_s3 = inlined_call_operand.vmem [shape: f32[16,16], index: 3, kind: input, shape index: {}]   ;;  %s1499_s4 = inlined_call_operand.vmem [shape: f32[2,8,1], index: 4, kind: input, shape index: {}]   ;;  %s1500_s5 = inlined_call_operand.vmem [shape: f32[2,8,1], index: 5, kind: input, shape index: {}]   ;;  %s1501_s6 = inlined_call_operand.vmem [shape: bf16[32,33], index: 6, kind: input, shape index: {}]   ;;  %s1502_s7 = inlined_call_operand.hbm [shape: bf16[16,33], index: 7, kind: input, shape index: {}]   ;;  %s1503_s8 = inlined_call_operand.hbm [shape: f32[2,33], index: 8, kind: input, shape index: {}]   ;;  %s1504_s9 = inlined_call_operand.hbm [shape: f32[16,32], index: 9, kind: input, shape index: {}]   ;;  %s1505_s10 = inlined_call_operand.hbm [shape: f32[16,16], index: 10, kind: input, shape index: {}]   ;;  %s1506_s11 = inlined_call_operand.vmem [shape: f32[2,8,1], index: 11, kind: input, shape index: {}]   ;;  %s1507_s12 = inlined_call_operand.vmem [shape: f32[2,8,1], index: 12, kind: input, shape index: {}]   ;;  %s1508_s13 = inlined_call_operand.hbm [shape: bf16[32,33], index: 13, kind: input, shape index: {}]   ;;  %s1509_s14 = inlined_call_operand.vmem [shape: bf16[16,33], index: 14, kind: input, shape index: {}]   ;;  %s1510_s15 = inlined_call_operand.vmem [shape: f32[2,33], index: 15, kind: input, shape index: {}]   ;;  %s1511_s16 = inlined_call_operand.hbm [shape: f32[2,128], index: 16, kind: output, shape index: {0}]   ;;  %s1512_s17 = inlined_call_operand.hbm [shape: f32[2,128], index: 17, kind: output, shape index: {1}]  }
   0x1   :  { %1514 = sst [smem:[#allocation22_spill]] %s1495_s0 }
   0x2   :  { %1515 = sst [smem:[#allocation23_spill]] %s1496_s1 }
   0x3   :  { %23 = vsyncpa [#allocation3], 0 }
   0x4   :  { %24 = vsyncpa [#allocation6], 0 }
   0x5   :  { %25 = vsyncpa [#allocation9], 0 }
   0x6   :  { %26 = vsyncpa [#allocation12], 0 }
   0x7   :  { %27 = vsyncpa [#allocation4], 0 }
   0x8   :  { %28 = vsyncpa [#allocation15], 0  ;;  %s1173_s24 = smov [#allocation5]  }
   0x9   :  { %s56_s25 = sshll.u32 %s1173_s24, 4  ;;  %s57_s25 = int_to_ptr.vmem [resolvable:$true] %s56_s25 }
   0xa   :  { %s1009_s26 = scalar_lea.vmem %s57_s25, 128  ;;  %p1014_p1 = scmp.lt.s32.totalorder %s57_s25, %s57_s25 }
   0xb   :  { %p1010_p0 = scmp.ne.s32.totalorder %s57_s25, %s1009_s26  ;;  %p1015_p2 = scmp.lt.s32.totalorder %s1009_s26, %s1009_s26 }
   0xd   :  { %p1016_p3 = por %p1015_p2, %p1014_p1 }
   0xf   :  { %p1017_p4 = pnand %p1016_p3, %p1010_p0 }
  0x11   :  { %1020 = shalt.err (!%p1017_p4)
}
  0x12   :  { %s1174_s27 = smov 64   ;;  %s1175_s28 = smov 4  }
  0x13   :  { %62 = dma.hbm_to_vmem [thread:$0]  %s1502_s7, 128, %s57_s25, [#allocation6], %s1174_s27, %s1174_s27, %s1175_s28  }
  0x14   :  { %s1176_s30 = smov [#allocation8]  }
  0x15   :  { %s78_s18 = sshll.u32 %s1176_s30, 4  ;;  %s79_s18 = int_to_ptr.vmem [resolvable:$true] %s78_s18 }
  0x16   :  { %s1029_s19 = scalar_lea.vmem %s79_s18, 256  ;;  %p1034_p6 = scmp.lt.s32.totalorder %s79_s18, %s79_s18 }
  0x17   :  { %p1030_p5 = scmp.ne.s32.totalorder %s79_s18, %s1029_s19  ;;  %p1035_p7 = scmp.lt.s32.totalorder %s1029_s19, %s1029_s19 }
  0x19   :  { %p1036_p8 = por %p1035_p7, %p1034_p6 }
  0x1b   :  { %p1037_p9 = pnand %p1036_p8, %p1030_p5 }
  0x1d   :  { %1040 = shalt.err (!%p1037_p9)
}
  0x1e   :  { %s1177_s1 = smov 128   ;;  %s1178_s20 = smov 8  }
  0x1f   :  { %84 = dma.hbm_to_vmem [thread:$0]  %s1504_s9, 256, %s79_s18, [#allocation9], %s1177_s1, %s1177_s1, %s1178_s20  }
  0x20   :  { %s1179_s7 = smov [#allocation2]   ;;  %s1180_s24 = smov [#allocation7]  }
  0x21   :  { %s35_s23 = sshll.u32 %s1179_s7, 4  ;;  %s69_s25 = sshll.u32 %s1180_s24, 4  ;;  %s36_s23 = int_to_ptr.vmem [resolvable:$true] %s35_s23  ;;  %s70_s25 = int_to_ptr.vmem [resolvable:$true] %s69_s25 }
  0x22   :  { %s1049_s26 = scalar_lea.vmem %s36_s23, 32  ;;  %p1054_p11 = scmp.lt.s32.totalorder %s36_s23, %s36_s23 }
  0x23   :  { %p1050_p10 = scmp.ne.s32.totalorder %s36_s23, %s1049_s26  ;;  %p1055_p12 = scmp.lt.s32.totalorder %s1049_s26, %s1049_s26 }
  0x25   :  { %p1056_p13 = por %p1055_p12, %p1054_p11 }
  0x27   :  { %p1057_p0 = pnand %p1056_p13, %p1050_p10 }
  0x29   :  { %1060 = shalt.err (!%p1057_p0)
}
  0x2a   :  { %s1516_s30 = sld [smem:[#allocation22_spill]]  ;;  %s1069_s19 = scalar_lea.vmem %s70_s25, 32 }
  0x2b   :  { %p1070_p1 = scmp.ne.s32.totalorder %s70_s25, %s1069_s19  ;;  %p1074_p2 = scmp.lt.s32.totalorder %s70_s25, %s70_s25 }
  0x2c   :  { %p1075_p3 = scmp.lt.s32.totalorder %s1069_s19, %s1069_s19 }
  0x2e   :  { %p1076_p4 = por %p1075_p3, %p1074_p2 }
  0x30   :  { %38 = dma.hbm_to_vmem [thread:$0]  %s1516_s30, 32, %s36_s23, [#allocation3]  }
  0x31   :  { %p1077_p5 = pnand %p1076_p4, %p1070_p1 }
  0x33   :  { %1080 = shalt.err (!%p1077_p5)
}
  0x34   :  { %72 = dma.hbm_to_vmem [thread:$0]  %s1503_s8, 32, %s70_s25, [#allocation6]  }
  0x35   :  { %s1181_s21 = smov [#allocation10]   ;;  %s1182_s7 = smov [#allocation11]  }
  0x36   :  { %s90_s22 = sshll.u32 %s1181_s21, 4  ;;  %s106_s24 = sshll.u32 %s1182_s7, 4  ;;  %s91_s22 = int_to_ptr.vmem [resolvable:$true] %s90_s22  ;;  %s107_s24 = int_to_ptr.vmem [resolvable:$true] %s106_s24 }
  0x37   :  { %s1089_s26 = scalar_lea.vmem %s91_s22, 256  ;;  %p1094_p7 = scmp.lt.s32.totalorder %s91_s22, %s91_s22 }
  0x38   :  { %p1090_p6 = scmp.ne.s32.totalorder %s91_s22, %s1089_s26  ;;  %p1095_p8 = scmp.lt.s32.totalorder %s1089_s26, %s1089_s26 }
  0x3a   :  { %p1096_p9 = por %p1095_p8, %p1094_p7 }
  0x3c   :  { %p1097_p10 = pnand %p1096_p9, %p1090_p6 }
  0x3e   :  { %1100 = shalt.err (!%p1097_p10)
}
  0x3f   :  { %96 = dma.hbm_to_vmem [thread:$0]  %s1505_s10, 256, %s91_s22, [#allocation9], %s1177_s1, %s1177_s1, %s1178_s20  }
  0x40   :  { %s1109_s8 = scalar_lea.vmem %s107_s24, 256  ;;  %p1114_p12 = scmp.lt.s32.totalorder %s107_s24, %s107_s24 }
  0x41   :  { %p1110_p11 = scmp.ne.s32.totalorder %s107_s24, %s1109_s8  ;;  %p1115_p13 = scmp.lt.s32.totalorder %s1109_s8, %s1109_s8 }
  0x43   :  { %p1116_p0 = por %p1115_p13, %p1114_p12 }
  0x45   :  { %p1117_p1 = pnand %p1116_p0, %p1110_p11 }
  0x47   :  { %1120 = shalt.err (!%p1117_p1)
}
  0x48   :  { %112 = dma.hbm_to_vmem [thread:$0]  %s1508_s13, 256, %s107_s24, [#allocation12], %s1174_s27, %s1174_s27, %s1175_s28  }
  0x49   :  { %1161 = dma.done.wait [#allocation3], 32  }
  0x4a   :  { %1162 = vsyncadd [#allocation3], 4294967264 }
  0x4b   :  { %1163 = dma.done.wait [#allocation6], 160  }
  0x4c   :  { %1164 = vsyncadd [#allocation6], 4294967136 }
  0x4d   :  { %1165 = dma.done.wait [#allocation9], 512  }
  0x4e   :  { %1166 = vsyncadd [#allocation9], 4294966784 }
  0x4f   :  { %1167 = dma.done.wait [#allocation12], 256  }
  0x50   :  { %1168 = vsyncadd [#allocation12], 4294967040  ;;  %v1183_v0 = vmov 0.0   ;;  %vm1184_vm0 = vmmov 0   ;;  %v266_v1 = vlaneseq  ;;  %v975_v2 = vld [vmem:[#allocation5] sm:$0xff]   ;;  %vm164_vm1 = vcmask 130048  }
  0x51   :  { %905 = vmatprep.subr.bf16.mxu1 %v1183_v0  ;;  %907 = vmatprep.mubr.msk.bf16.mxu1 %vm1184_vm0, %v1183_v0  ;;  %v153_v3 = vld [vmem:[%s1498_s3] sm:$0xff]  ;;  %v154_v4 = vld [vmem:[%s1498_s3 + $0x8] sm:$0xff]  ;;  %vm221_vm2 = vcmask 261120   ;;  %vm277_vm3 = vcmask 254976   ;;  %v979_v34 = vld [vmem:[#allocation11 + $0x8] sm:$0xff]   ;;  %v1186_v47 = vmov 32  }
  0x52   :  { %919 = vmatprep.subr.bf16.mxu0 %v1183_v0  ;;  %927 = vmatprep.mubr.msk.bf16.mxu0 %vm1184_vm0, %v1183_v0  ;;  %v155_v5 = vpack.c.bf16 %v154_v4, %v153_v3  ;;  %v976_v6 = vld [vmem:[%s1501_s6 + $0x8] sm:$0xff]   ;;  %v1324_v7 = vshrl.u32 %v266_v1, 7  ;;  %v977_v8 = vld [vmem:[%s1501_s6] sm:$0xff]   ;;  %v508_v38 = vld [vmem:[#allocation8 + $0x8] sm:$0xff]  ;;  %vm310_vm4 = vcmask 269568   ;;  %vm415_vm5 = vcmask 1041409  }
  0x53   :  { %906 = vmatpush3.bf16.msra.mxu1 %v975_v2  ;;  %v146_v9 = vld [vmem:[%s1497_s2] sm:$0xff]  ;;  %v147_v10 = vld [vmem:[%s1497_s2 + $0x8] sm:$0xff]  ;;  %973 = vset.pattern.permute.xlu1 %v1186_v47  ;;  %vm461_vm6 = vcmask 523264   ;;  %s1187_s22 = smov [#allocation13]  }
  0x54   :  { %911 = vmatprep.subr.bf16.mxu1 %v1183_v0  ;;  %v1340_v11 = vsub.s32 1, %v1324_v7  ;;  %v136_v12 = vld [vmem:[#allocation2] sm:$0x3]  ;;  %v148_v13 = vpack.c.bf16 %v147_v10, %v146_v9  ;;  %v1343_v14 = vld [vmem:[#allocation7] sm:$0x3]  ;;  %v980_v36 = vld [vmem:[#allocation11] sm:$0xff]   ;;  %974 = vset.pattern.permute.xlu0 %v1186_v47 }
  0x55   :  { %v1348_v15 = vld [vmem:[%s1510_s15] sm:$0x3]  ;;  %v295_v21 = vld [vmem:[%s1499_s4 + $0x8] sm:$0xff]  ;;  %v268_v50 = vsub.s32 0, %v1324_v7  ;;  %s843_s7 = sshll.u32 %s1187_s22, 4  ;;  %s844_s7 = int_to_ptr.vmem [resolvable:$true] %s843_s7 }
  0x56   :  { %908 = vmatmul.mubr.msk.bf16.vlgmr.msra.gmra.mxu1 %vm164_vm1, %v155_v5  ;;  %v294_v16 = vld [vmem:[%s1499_s4] sm:$0xff]  ;;  %v275_v18 = vrot.slane %v1343_v14, %v1340_v11  ;;  %v634_v19 = vrot.slane %v1348_v15, %v1340_v11  ;;  %v297_v22 = vsub.f32 1.0, %v295_v21  ;;  %v653_v28 = vld [vmem:[%s1506_s11 + $0x8] sm:$0xff]  ;;  %s1185_s4 = smov 32   ;;  %s1121_s24 = scalar_lea.vmem %s844_s7, 32 }
  0x57   :  { %912 = vmatpush3.bf16.msra.mxu1 %v976_v6  ;;  %915 = vmatprep.mubr.msk.bf16.mxu1 %vm1184_vm0, %v1183_v0  ;;  %v978_v17 = vld [vmem:[%s1509_s14] sm:$0xff]   ;;  %v296_v20 = vsub.f32 1.0, %v294_v16  ;;  %v655_v32 = vsub.f32 1.0, %v653_v28  ;;  %v507_v37 = vld [vmem:[#allocation8] sm:$0xff]  ;;  %v269_v54 = vrot.slane %v1343_v14, %v268_v50  ;;  %v628_v21 = vrot.slane %v1348_v15, %v268_v50  ;;  %p1122_p2 = scmp.ne.s32.totalorder %s844_s7, %s1121_s24  ;;  %p1126_p3 = scmp.lt.s32.totalorder %s844_s7, %s844_s7 }
  0x58   :  { %913 = vmatprep.subr.bf16.mxu1 %v1183_v0  ;;  %v276_v23 = vmul.f32 %v275_v18, %v136_v12  ;;  %v635_v24 = vmul.f32 %v634_v19, %v136_v12  ;;  %v514_v26 = vld [vmem:[#allocation10] sm:$0xff]  ;;  %v299_v27 = vmul.f32 1e+30, %v297_v22  ;;  %v515_v29 = vld [vmem:[#allocation10 + $0x8] sm:$0xff]  ;;  %v509_v39 = vpack.c.bf16 %v508_v38, %v507_v37  ;;  %p1127_p4 = scmp.lt.s32.totalorder %s1121_s24, %s1121_s24 }
  0x59   :  { %v298_v25 = vmul.f32 1e+30, %v296_v20  ;;  %v516_v33 = vpack.c.bf16 %v515_v29, %v514_v26  ;;  %v657_v35 = vmul.f32 1e+30, %v655_v32  ;;  %v347_v40 = vld [vmem:[%s1500_s5] sm:$0xff]  ;;  %v348_v41 = vld [vmem:[%s1500_s5 + $0x8] sm:$0xff] }
  0x5a   :  { %v278_v30 = vsel %vm277_vm3, %v276_v23, 0.0  ;;  %v636_v31 = vsel %vm277_vm3, %v635_v24, 0.0  ;;  %v652_v42 = vld [vmem:[%s1506_s11] sm:$0xff]  ;;  %v705_v46 = vld [vmem:[%s1507_s12 + $0x8] sm:$0xff]  ;;  %p1128_p5 = por %p1127_p4, %p1126_p3 }
  0x5b   :  { %914 = vmatpush3.bf16.msra.mxu1 %v977_v8  ;;  %279 = vadd.xlane.f32.xlu0 %v278_v30  ;;  %v654_v43 = vsub.f32 1.0, %v652_v42  ;;  %v704_v44 = vld [vmem:[%s1507_s12] sm:$0xff]  ;;  %s1517_s12 = sld [smem:[#allocation23_spill]] }
  0x5c   :  { %931 = vmatprep.subr.bf16.mxu1 %v1183_v0  ;;  %302 = vrot.lane.b32.xlu1 %v298_v25, %s1185_s4  ;;  %p1129_p6 = pnand %p1128_p5, %p1122_p2 }
  0x5d   :  { %v656_v45 = vmul.f32 1e+30, %v654_v43 }
  0x5e   :  { %916 = vmatmul.mubr.msk.bf16.vlgmr.msra.gmra.mxu1 %vm221_vm2, %v148_v13 }
  0x5f   :  { %932 = vmatpush3.bf16.msra.mxu1 %v978_v17  ;;  %933 = vmatprep.mubr.msk.bf16.mxu1 %vm1184_vm0, %v1183_v0 }
  0x60   :  { %937 = vmatprep.subr.bf16.mxu1 %v1183_v0  ;;  %637 = vadd.xlane.f32.xlu0 %v636_v31 }
  0x61   :  { %304 = vrot.lane.b32.xlu1 %v299_v27, %s1185_s4 }
  0x65   :  { %662 = vrot.lane.b32.xlu1 %v657_v35, %s1185_s4 }
  0x66   :  { %934 = vmatmul.mubr.msk.bf16.vlgmr.msra.gmra.mxu1 %vm164_vm1, %v516_v33 }
  0x67   :  { %938 = vmatpush3.bf16.msra.mxu1 %v979_v34  ;;  %941 = vmatprep.mubr.msk.bf16.mxu1 %vm1184_vm0, %v1183_v0 }
  0x68   :  { %939 = vmatprep.subr.bf16.mxu1 %v1183_v0 }
  0x69   :  { %351 = vrot.lane.b32.xlu1 %v347_v40, %s1185_s4 }
  0x6b   :  { %940 = vmatpush3.bf16.msra.mxu1 %v980_v36 }
  0x6d   :  { %353 = vrot.lane.b32.xlu1 %v348_v41, %s1185_s4 }
  0x6e   :  { %942 = vmatmul.mubr.msk.bf16.vlgmr.msra.gmra.mxu1 %vm221_vm2, %v509_v39 }
  0x71   :  { %708 = vrot.lane.b32.xlu1 %v704_v44, %s1185_s4 }
  0x75   :  { %710 = vrot.lane.b32.xlu1 %v705_v46, %s1185_s4 }
  0x76   :  { %660 = vrot.lane.b32.xlu0 %v656_v45, %s1185_s4 }
  0xce   :  { %v303_v59 = vpop.permute.xlu1 %302 }
  0xd3   :  { %v305_v6 = vpop.permute.xlu1 %304 }
  0xd7   :  { %v663_v44 = vpop.permute.xlu1 %662 }
  0xe4   :  { %v280_v53 = vpop.xlane.xlu0 %279 }
  0xe5   :  { %v285_v57 = vrot.slane %v280_v53, %v268_v50  ;;  %v289_v62 = vrot.slane %v280_v53, %v1340_v11 }
  0xe9   :  { %v638_v20 = vpop.xlane.xlu0 %637 }
  0xea   :  { %v643_v26 = vrot.slane %v638_v20, %v268_v50  ;;  %v647_v39 = vrot.slane %v638_v20, %v1340_v11 }
  0xed   :  { %v661_v34 = vpop.permute.xlu0 %660 }
 0x116   :  { %v202_v48 = vpop.f32.mrf.mxu1 }
 0x118   :  { %v909_v49 = vpop.f32.mrf.mxu1 }
 0x11a   :  { %v205_v51 = vpop.f32.mrf.mxu1 }
 0x11c   :  { %v910_v52 = vpop.f32.mrf.mxu1 }
 0x11e   :  { %v259_v55 = vpop.f32.mrf.mxu1 }
 0x11f   :  { %v260_v56 = vadd.f32 %v259_v55, %v202_v48 }
 0x120   :  { %v917_v58 = vpop.f32.mrf.mxu1 }
 0x121   :  { %v1401_v60 = vadd.f32 %v269_v54, %v260_v56  ;;  %v352_v58 = vpop.permute.xlu1 %351 }
 0x122   :  { %v262_v61 = vpop.f32.mrf.mxu1 }
 0x123   :  { %v263_v63 = vadd.f32 %v262_v61, %v205_v51  ;;  %v292_v1 = vadd.f32 %v285_v57, %v1401_v60 }
 0x124   :  { %v918_v2 = vpop.f32.mrf.mxu1 }
 0x125   :  { %v1405_v3 = vadd.f32 %v269_v54, %v263_v63  ;;  %v308_v4 = vsub.f32 %v292_v1, %v303_v59 }
 0x126   :  { %v562_v5 = vpop.f32.mrf.mxu1 }
 0x127   :  { %v311_v7 = vsel %vm310_vm4, %v308_v4, -inf  ;;  %v293_v8 = vadd.f32 %v289_v62, %v1405_v3 }
 0x128   :  { %v312_v9 = vrot.slane %v311_v7, 4  ;;  %v935_v10 = vpop.f32.mrf.mxu1 }
 0x129   :  { %v309_v12 = vsub.f32 %v293_v8, %v305_v6  ;;  %v354_v8 = vpop.permute.xlu1 %353 }
 0x12a   :  { %v313_v13 = vmax.f32 %v311_v7, %v312_v9  ;;  %v565_v14 = vpop.f32.mrf.mxu1 }
 0x12b   :  { %v318_v16 = vsel %vm310_vm4, %v309_v12, -inf }
 0x12c   :  { %v314_v17 = vrot.slane %v313_v13, 2  ;;  %v319_v18 = vrot.slane %v318_v16, 4  ;;  %v936_v19 = vpop.f32.mrf.mxu1 }
 0x12e   :  { %v315_v22 = vmax.f32 %v313_v13, %v314_v17  ;;  %v320_v23 = vmax.f32 %v318_v16, %v319_v18  ;;  %v618_v24 = vpop.f32.mrf.mxu1 }
 0x12f   :  { %v619_v25 = vadd.f32 %v618_v24, %v562_v5 }
 0x130   :  { %v316_v27 = vrot.slane %v315_v22, 1  ;;  %v321_v28 = vrot.slane %v320_v23, 2  ;;  %v943_v29 = vpop.f32.mrf.mxu1 }
 0x131   :  { %v1411_v30 = vadd.f32 %v628_v21, %v619_v25  ;;  %v709_v25 = vpop.permute.xlu1 %708 }
 0x132   :  { %v317_v31 = vmax.f32 %v315_v22, %v316_v27  ;;  %v322_v32 = vmax.f32 %v320_v23, %v321_v28  ;;  %v621_v33 = vpop.f32.mrf.mxu1 }
 0x133   :  { %v622_v35 = vadd.f32 %v621_v33, %v565_v14  ;;  %v650_v36 = vadd.f32 %v643_v26, %v1411_v30 }
 0x134   :  { %v325_v37 = vsub.f32 %v308_v4, %v317_v31  ;;  %v323_v38 = vrot.slane %v322_v32, 1  ;;  %v944_v15 = vpop.f32.mrf.mxu1 }
 0x135   :  { %v1415_v40 = vadd.f32 %v628_v21, %v622_v35  ;;  %v666_v41 = vsub.f32 %v650_v36, %v661_v34  ;;  %v711_v34 = vpop.permute.xlu1 %710 }
 0x136   :  { %v327_v42 = vmul.f32 1.442695, %v325_v37  ;;  %v324_v43 = vmax.f32 %v322_v32, %v323_v38 }
 0x137   :  { %v668_v45 = vsel %vm310_vm4, %v666_v41, -inf  ;;  %v651_v46 = vadd.f32 %v647_v39, %v1415_v40 }
 0x138   :  { %985 = vpow2.f32 %v327_v42  ;;  %v326_v47 = vsub.f32 %v309_v12, %v324_v43  ;;  %v669_v48 = vrot.slane %v668_v45, 4 }
 0x139   :  { %v667_v49 = vsub.f32 %v651_v46, %v663_v44 }
 0x13a   :  { %v329_v50 = vmul.f32 1.442695, %v326_v47  ;;  %v670_v51 = vmax.f32 %v668_v45, %v669_v48  ;;  %v1427_v48 = vld [vmem:[%s1517_s12 + $0x18] sm:$0xff]  }
 0x13b   :  { %v675_v52 = vsel %vm310_vm4, %v667_v49, -inf  ;;  %920 = vmatpush3.bf16.msra.mxu0 %v1427_v48 }
 0x13c   :  { %987 = vpow2.f32 %v329_v50  ;;  %v671_v11 = vrot.slane %v670_v51, 2  ;;  %v676_v53 = vrot.slane %v675_v52, 4  ;;  %v1433_v50 = vld [vmem:[%s1517_s12 + $0x10] sm:$0xff]   ;;  %921 = vmatprep.subr.bf16.mxu0 %v1183_v0 }
 0x13e   :  { %v672_v54 = vmax.f32 %v670_v51, %v671_v11  ;;  %v677_v55 = vmax.f32 %v675_v52, %v676_v53  ;;  %v1440_v51 = vld [vmem:[%s1517_s12 + $0x8] sm:$0xff]  }
 0x13f   :  { %922 = vmatpush3.bf16.msra.mxu0 %v1433_v50 }
 0x140   :  { %v673_v56 = vrot.slane %v672_v54, 1  ;;  %v678_v57 = vrot.slane %v677_v55, 2  ;;  %923 = vmatprep.subr.bf16.mxu0 %v1183_v0 }
 0x142   :  { %v674_v59 = vmax.f32 %v672_v54, %v673_v56  ;;  %v679_v61 = vmax.f32 %v677_v55, %v678_v57 }
 0x143   :  { %924 = vmatpush3.bf16.msra.mxu0 %v1440_v51 }
 0x144   :  { %v682_v62 = vsub.f32 %v666_v41, %v674_v59  ;;  %v680_v63 = vrot.slane %v679_v61, 1  ;;  %925 = vmatprep.subr.bf16.mxu0 %v1183_v0 }
 0x145   :  { %v986_v1 = vpop.eup %985 }
 0x146   :  { %v331_v2 = vsel %vm310_vm4, %v986_v1, 0.0  ;;  %v684_v4 = vmul.f32 1.442695, %v682_v62  ;;  %v681_v5 = vmax.f32 %v679_v61, %v680_v63  ;;  %v357_v6 = vmul.f32 %v986_v1, %v352_v58 }
 0x147   :  { %v332_v7 = vrot.slane %v331_v2, 4 }
 0x148   :  { %989 = vpow2.f32 %v684_v4  ;;  %v683_v9 = vsub.f32 %v667_v49, %v681_v5  ;;  %v359_v10 = vsub.f32 %v986_v1, %v357_v6 }
 0x149   :  { %v988_v12 = vpop.eup %987  ;;  %v333_v13 = vadd.f32 %v332_v7, %v331_v2 }
 0x14a   :  { %v338_v14 = vsel %vm310_vm4, %v988_v12, 0.0  ;;  %v686_v16 = vmul.f32 1.442695, %v683_v9  ;;  %v358_v17 = vmul.f32 %v988_v12, %v354_v8  ;;  %389 = vperm.xlu1 %973, %v359_v10  }
 0x14b   :  { %v339_v18 = vrot.slane %v338_v14, 4  ;;  %v334_v19 = vrot.slane %v333_v13, 2 }
 0x14c   :  { %991 = vpow2.f32 %v686_v16  ;;  %v360_v20 = vsub.f32 %v988_v12, %v358_v17 }
 0x14d   :  { %v335_v21 = vadd.f32 %v334_v19, %v333_v13  ;;  %v340_v22 = vadd.f32 %v339_v18, %v338_v14 }
 0x14e   :  { %394 = vperm.xlu0 %974, %v360_v20  }
 0x14f   :  { %v336_v23 = vrot.slane %v335_v21, 1  ;;  %v341_v24 = vrot.slane %v340_v22, 2 }
 0x151   :  { %v337_v26 = vadd.f32 %v336_v23, %v335_v21  ;;  %v342_v27 = vadd.f32 %v341_v24, %v340_v22 }
 0x152   :  { %363 = vperm.xlu0 %974, %v357_v6   ;;  %v1452_v6 = vld [vmem:[%s1517_s12] sm:$0xff]  }
 0x153   :  { %993 = vrcp.f32 %v337_v26  ;;  %v343_v28 = vrot.slane %v342_v27, 1  ;;  %926 = vmatpush3.bf16.msra.mxu0 %v1452_v6 }
 0x154   :  { %945 = vmatprep.subr.bf16.mxu0 %v1183_v0 }
 0x155   :  { %v990_v29 = vpop.eup %989  ;;  %v344_v36 = vadd.f32 %v343_v28, %v342_v27 }
 0x156   :  { %v688_v31 = vsel %vm310_vm4, %v990_v29, 0.0  ;;  %v714_v32 = vmul.f32 %v990_v29, %v709_v25 }
 0x157   :  { %v689_v33 = vrot.slane %v688_v31, 4  ;;  %995 = vrcp.f32 %v344_v36 }
 0x158   :  { %v716_v35 = vsub.f32 %v990_v29, %v714_v32  ;;  %720 = vperm.xlu0 %974, %v714_v32  }
 0x159   :  { %v992_v37 = vpop.eup %991  ;;  %v690_v38 = vadd.f32 %v689_v33, %v688_v31 }
 0x15a   :  { %v695_v15 = vsel %vm310_vm4, %v992_v37, 0.0  ;;  %v715_v39 = vmul.f32 %v992_v37, %v711_v34  ;;  %746 = vperm.xlu1 %973, %v716_v35  }
 0x15b   :  { %v691_v41 = vrot.slane %v690_v38, 2  ;;  %v696_v52 = vrot.slane %v695_v15, 4 }
 0x15c   :  { %v717_v42 = vsub.f32 %v992_v37, %v715_v39 }
 0x15d   :  { %v692_v43 = vadd.f32 %v691_v41, %v690_v38  ;;  %v697_v11 = vadd.f32 %v696_v52, %v695_v15 }
 0x15e   :  { %751 = vperm.xlu1 %973, %v717_v42  }
 0x15f   :  { %v693_v44 = vrot.slane %v692_v43, 1  ;;  %v698_v53 = vrot.slane %v697_v11, 2 }
 0x160   :  { %v994_v45 = vpop.eup %993 }
 0x161   :  { %427 = vperm.xlu0 %974, %v994_v45   ;;  %v694_v46 = vadd.f32 %v693_v44, %v692_v43  ;;  %v699_v54 = vadd.f32 %v698_v53, %v697_v11 }
 0x162   :  { %368 = vperm.xlu1 %973, %v358_v17  }
 0x163   :  { %997 = vrcp.f32 %v694_v46  ;;  %v700_v58 = vrot.slane %v699_v54, 1 }
 0x164   :  { %v996_v47 = vpop.eup %995 }
 0x165   :  { %v701_v2 = vadd.f32 %v700_v58, %v699_v54 }
 0x166   :  { %725 = vperm.xlu1 %973, %v715_v39  }
 0x167   :  { %999 = vrcp.f32 %v701_v2 }
 0x16a   :  { %431 = vperm.xlu1 %973, %v996_v47  }
 0x170   :  { %v998_v49 = vpop.eup %997 }
 0x171   :  { %783 = vperm.xlu1 %973, %v998_v49  }
 0x174   :  { %v1000_v26 = vpop.eup %999 }
 0x1c5   :  { %v390_v55 = vpop.permute.xlu1 %389 }
 0x1c6   :  { %v397_v56 = vmul.f32 %v390_v55, %v1401_v60 }
 0x1c8   :  { %v399_v57 = vsel %vm221_vm2, %v397_v56, 0.0 }
 0x1c9   :  { %v400_v59 = vrot.slane %v399_v57, 4  ;;  %v395_v61 = vpop.permute.xlu0 %394 }
 0x1ca   :  { %v398_v62 = vmul.f32 %v395_v61, %v1405_v3 }
 0x1cb   :  { %v401_v63 = vadd.f32 %v400_v59, %v399_v57 }
 0x1cc   :  { %v406_v1 = vsel %vm221_vm2, %v398_v62, 0.0 }
 0x1cd   :  { %v402_v4 = vrot.slane %v401_v63, 2  ;;  %v407_v5 = vrot.slane %v406_v1, 4  ;;  %v364_v39 = vpop.permute.xlu0 %363 }
 0x1ce   :  { %v371_v42 = vmul.f32 %v364_v39, %v1401_v60 }
 0x1cf   :  { %v403_v7 = vadd.f32 %v402_v4, %v401_v63  ;;  %v408_v8 = vadd.f32 %v407_v5, %v406_v1 }
 0x1d0   :  { %v373_v44 = vsel %vm221_vm2, %v371_v42, 0.0 }
 0x1d1   :  { %v409_v9 = vrot.slane %v408_v8, 2  ;;  %v404_v10 = vrot.slane %v403_v7, 1  ;;  %v374_v46 = vrot.slane %v373_v44, 4 }
 0x1d3   :  { %v410_v12 = vadd.f32 %v409_v9, %v408_v8  ;;  %v405_v17 = vadd.f32 %v404_v10, %v403_v7  ;;  %v375_v49 = vadd.f32 %v374_v46, %v373_v44  ;;  %v721_v11 = vpop.permute.xlu0 %720 }
 0x1d4   :  { %v728_v56 = vmul.f32 %v721_v11, %v1411_v30 }
 0x1d5   :  { %v411_v13 = vrot.slane %v410_v12, 1  ;;  %v747_v14 = vpop.permute.xlu1 %746  ;;  %v376_v55 = vrot.slane %v375_v49, 2 }
 0x1d6   :  { %v754_v16 = vmul.f32 %v747_v14, %v1411_v30  ;;  %v730_v58 = vsel %vm221_vm2, %v728_v56, 0.0 }
 0x1d7   :  { %v412_v18 = vadd.f32 %v411_v13, %v410_v12  ;;  %v377_v60 = vadd.f32 %v376_v55, %v375_v49  ;;  %v731_v63 = vrot.slane %v730_v58, 4 }
 0x1d8   :  { %v756_v19 = vsel %vm221_vm2, %v754_v16, 0.0 }
 0x1d9   :  { %v757_v20 = vrot.slane %v756_v19, 4  ;;  %v752_v21 = vpop.permute.xlu1 %751  ;;  %v420_v22 = vsel %vm415_vm5, %v412_v18, %v405_v17  ;;  %v378_v62 = vrot.slane %v377_v60, 1  ;;  %v732_v7 = vadd.f32 %v731_v63, %v730_v58 }
 0x1da   :  { %v755_v23 = vmul.f32 %v752_v21, %v1415_v40  ;;  %421 = vrot.lane.b32.xlu0 %v420_v22, %s1185_s4 }
 0x1db   :  { %v758_v24 = vadd.f32 %v757_v20, %v756_v19  ;;  %v379_v5 = vadd.f32 %v378_v62, %v377_v60  ;;  %v733_v13 = vrot.slane %v732_v7, 2 }
 0x1dc   :  { %v763_v25 = vsel %vm221_vm2, %v755_v23, 0.0  ;;  %v428_v1 = vpop.permute.xlu0 %427 }
 0x1dd   :  { %v759_v27 = vrot.slane %v758_v24, 2  ;;  %v764_v28 = vrot.slane %v763_v25, 4  ;;  %v369_v15 = vpop.permute.xlu1 %368  ;;  %v734_v18 = vadd.f32 %v733_v13, %v732_v7 }
 0x1de   :  { %787 = vperm.xlu0 %974, %v1000_v26   ;;  %v372_v41 = vmul.f32 %v369_v15, %v1405_v3 }
 0x1df   :  { %v760_v29 = vadd.f32 %v759_v27, %v758_v24  ;;  %v765_v31 = vadd.f32 %v764_v28, %v763_v25  ;;  %v735_v20 = vrot.slane %v734_v18, 1 }
 0x1e0   :  { %v380_v43 = vsel %vm221_vm2, %v372_v41, 0.0 }
 0x1e1   :  { %v766_v32 = vrot.slane %v765_v31, 2  ;;  %v761_v33 = vrot.slane %v760_v29, 1  ;;  %v381_v45 = vrot.slane %v380_v43, 4  ;;  %v726_v52 = vpop.permute.xlu1 %725  ;;  %v736_v23 = vadd.f32 %v735_v20, %v734_v18 }
 0x1e2   :  { %v729_v54 = vmul.f32 %v726_v52, %v1415_v40 }
 0x1e3   :  { %v767_v34 = vadd.f32 %v766_v32, %v765_v31  ;;  %v762_v36 = vadd.f32 %v761_v33, %v760_v29  ;;  %v382_v47 = vadd.f32 %v381_v45, %v380_v43 }
 0x1e4   :  { %v737_v3 = vsel %vm221_vm2, %v729_v54, 0.0 }
 0x1e5   :  { %v768_v35 = vrot.slane %v767_v34, 1  ;;  %v383_v53 = vrot.slane %v382_v47, 2  ;;  %v738_v61 = vrot.slane %v737_v3, 4  ;;  %v432_v8 = vpop.permute.xlu1 %431 }
 0x1e6   :  { %v433_v10 = vsel %vm415_vm5, %v432_v8, %v428_v1 }
 0x1e7   :  { %v769_v37 = vadd.f32 %v768_v35, %v767_v34  ;;  %v384_v57 = vadd.f32 %v383_v53, %v382_v47  ;;  %v739_v4 = vadd.f32 %v738_v61, %v737_v3 }
 0x1e9   :  { %v776_v38 = vsel %vm415_vm5, %v769_v37, %v762_v36  ;;  %v385_v59 = vrot.slane %v384_v57, 1  ;;  %v740_v40 = vrot.slane %v739_v4, 2 }
 0x1ea   :  { %777 = vrot.lane.b32.xlu1 %v776_v38, %s1185_s4 }
 0x1eb   :  { %v386_v2 = vadd.f32 %v385_v59, %v384_v57  ;;  %v741_v16 = vadd.f32 %v740_v40, %v739_v4 }
 0x1ec   :  { %v784_v22 = vpop.permute.xlu1 %783 }
 0x1ed   :  { %v416_v9 = vsel %vm415_vm5, %v386_v2, %v379_v5  ;;  %v742_v19 = vrot.slane %v741_v16, 1 }
 0x1ef   :  { %v743_v21 = vadd.f32 %v742_v19, %v741_v16 }
 0x24c   :  { %v422_v30 = vpop.permute.xlu0 %421 }
 0x24d   :  { %v424_v12 = vsel %vm221_vm2, %v416_v9, %v422_v30 }
 0x24e   :  { %v435_v14 = vmul.f32 %v433_v10, %v424_v12 }
 0x250   :  { %v436_v17 = vpack.c.bf16 %v435_v14, %v435_v14 }
 0x252   :  { %928 = vmatmul.mubr.msk.bf16.vlgmr.msra.gmra.mxu0 %vm461_vm6, %v436_v17 }
 0x253   :  { %946 = vmatpush3.bf16.msra.mxu0 %v1427_v48  ;;  %953 = vmatprep.mubr.msk.bf16.mxu0 %vm1184_vm0, %v1183_v0  ;;  %v772_v48 = vsel %vm415_vm5, %v743_v21, %v736_v23 }
 0x254   :  { %947 = vmatprep.subr.bf16.mxu0 %v1183_v0 }
 0x257   :  { %948 = vmatpush3.bf16.msra.mxu0 %v1433_v50 }
 0x258   :  { %949 = vmatprep.subr.bf16.mxu0 %v1183_v0 }
 0x259   :  { %v788_v24 = vpop.permute.xlu0 %787 }
 0x25a   :  { %v789_v26 = vsel %vm415_vm5, %v788_v24, %v784_v22 }
 0x25b   :  { %950 = vmatpush3.bf16.msra.mxu0 %v1440_v51 }
 0x25c   :  { %v778_v25 = vpop.permute.xlu1 %777  ;;  %951 = vmatprep.subr.bf16.mxu0 %v1183_v0 }
 0x25d   :  { %v780_v27 = vsel %vm221_vm2, %v772_v48, %v778_v25 }
 0x25e   :  { %v791_v28 = vmul.f32 %v789_v26, %v780_v27 }
 0x25f   :  { %952 = vmatpush3.bf16.msra.mxu0 %v1452_v6 }
 0x260   :  { %v792_v50 = vpack.c.bf16 %v791_v28, %v791_v28 }
 0x262   :  { %954 = vmatmul.mubr.msk.bf16.vlgmr.msra.gmra.mxu0 %vm461_vm6, %v792_v50 }
 0x312   :  { %v499_v29 = vpop.f32.mrf.mxu0 }
 0x313   :  { %505 = vst [vmem:[#allocation13] sm:$0x3] %v499_v29 }
 0x314   :  { %v929_v51 = vpop.f32.mrf.mxu0 }
 0x315   :  { %1132 = shalt.err (!%p1129_p6)
}
 0x316   :  { %846 = dma.vmem_to_hbm [thread:$0]  %s844_s7, 32, %s1511_s16, [#allocation4]   ;;  %v502_v0 = vpop.f32.mrf.mxu0 }
 0x317   :  { %s1188_s23 = smov [#allocation14]  }
 0x318   :  { %v930_v6 = vpop.f32.mrf.mxu0  ;;  %s853_s15 = sshll.u32 %s1188_s23, 4  ;;  %s854_s15 = int_to_ptr.vmem [resolvable:$true] %s853_s15 }
 0x319   :  { %s1141_s14 = scalar_lea.vmem %s854_s15, 32  ;;  %p1146_p8 = scmp.lt.s32.totalorder %s854_s15, %s854_s15 }
 0x31a   :  { %p1142_p7 = scmp.ne.s32.totalorder %s854_s15, %s1141_s14  ;;  %p1147_p9 = scmp.lt.s32.totalorder %s1141_s14, %s1141_s14 }
 0x31c   :  { %p1148_p10 = por %p1147_p9, %p1146_p8 }
 0x31e   :  { %p1149_p11 = pnand %p1148_p10, %p1142_p7 }
 0x322   :  { %v830_v31 = vpop.f32.mrf.mxu0 }
 0x323   :  { %836 = vst [vmem:[#allocation14] sm:$0x3] %v830_v31 }
 0x324   :  { %v955_v32 = vpop.f32.mrf.mxu0 }
 0x325   :  { %1152 = shalt.err (!%p1149_p11)
}
 0x326   :  { %856 = dma.vmem_to_hbm [thread:$0]  %s854_s15, 32, %s1512_s17, [#allocation15]   ;;  %v833_v33 = vpop.f32.mrf.mxu0 }
 0x328   :  { %v956_v34 = vpop.f32.mrf.mxu0 }
 0x329   :  { %1169 = dma.done.wait [#allocation4], 32  }
 0x32a   :  { %1170 = vsyncadd [#allocation4], 4294967264 }
 0x32b   :  { %1171 = dma.done.wait [#allocation15], 32  }
 0x32c   :  { %1172 = vsyncadd [#allocation15], 4294967264 }
 0x32d   :  { %863 = vsyncpa [#allocation3], 1 }
 0x32e   :  { %864 = vsyncpa [#allocation6], 1 }
 0x32f   :  { %865 = vsyncpa [#allocation9], 1 }
 0x330   :  { %866 = vsyncpa [#allocation12], 1 }
 0x331   :  { %867 = vsyncpa [#allocation4], 1 }
 0x332   :  { %868 = vsyncpa [#allocation15], 1 }

</bundles_post_ra>
